<compile_context>
chip_gen: v5e
topology: v5e:2x2
jax: 0.10.0
libtpu: 0.0.40
codegen_flags: <defaults>
</compile_context>

<pallas_src>
import jax
import jax.numpy as jnp
from jax.experimental import pallas as pl
from jax.experimental.pallas import tpu as pltpu


def _round_up(n, m):
    return ((n + m - 1) // m) * m


def multimodal_kernel(x1_ref, x2_ref, x3_ref, x4_ref,
                      w1_ref, w2_ref, w3_ref, w4_ref, bh_ref,
                      w5_ref, b5_ref, o_ref):
    # Fused hidden: four slice-dots into the same [tile_b, 4H] f32 accumulator.
    # (W_i is column-padded, so each dot only contributes to its own H-wide block.)
    h = jnp.dot(x1_ref[...], w1_ref[...], preferred_element_type=jnp.float32)
    h = h + jnp.dot(x2_ref[...], w2_ref[...], preferred_element_type=jnp.float32)
    h = h + jnp.dot(x3_ref[...], w3_ref[...], preferred_element_type=jnp.float32)
    h = h + jnp.dot(x4_ref[...], w4_ref[...], preferred_element_type=jnp.float32)
    # Bias + ReLU in f32 (biases/fc5 params are kept f32 even in the bf16 path).
    h = jnp.maximum(h + bh_ref[...], 0.0)
    # fc5 on the already-contiguous hidden slab.
    out = jnp.dot(h, w5_ref[...], preferred_element_type=jnp.float32) + b5_ref[...]
    o_ref[...] = out.astype(o_ref.dtype)


def pack_params(params, hidden):
    """One-time wrapper-side packing of PyTorch-style params.

    Returns (w1p, w2p, w3p, w4p) each [in_i, 4H] (branch i's weight in column
    block i*H:(i+1)*H, zeros elsewhere), bh [1, 4H], w5 [4H, out], b5 [1, out].
    """
    w1, b1, w2, b2, w3, b3, w4, b4, w5, b5 = params
    H = hidden

    def pad_cols(w, idx):
        wp = jnp.zeros((w.shape[0], 4 * H), w.dtype)
        return wp.at[:, idx * H:(idx + 1) * H].set(w)

    w1p = pad_cols(w1, 0)
    w2p = pad_cols(w2, 1)
    w3p = pad_cols(w3, 2)
    w4p = pad_cols(w4, 3)
    bh = jnp.concatenate([b1, b2, b3, b4], axis=1)
    return w1p, w2p, w3p, w4p, bh, w5, b5


def multimodal_forward(x1, x2, x3, x4, packed, *, compute_dtype=jnp.float32):
    w1p, w2p, w3p, w4p, bh, w5, b5 = packed
    B = x1.shape[0]
    in_sizes = (x1.shape[1], x2.shape[1], x3.shape[1], x4.shape[1])
    kin = sum(in_sizes)
    H4 = w1p.shape[1]
    out_dim = w5.shape[1]

    if compute_dtype != jnp.float32:
        # Halve the dominant x HBM stream / feed the MXU native bf16 inputs.
        # Accumulation, bias+ReLU and fc5 (tiny, resident, f32) are unchanged.
        x1, x2, x3, x4 = (x.astype(compute_dtype) for x in (x1, x2, x3, x4))
        w1p, w2p, w3p, w4p = (w.astype(compute_dtype) for w in (w1p, w2p, w3p, w4p))

    # Batch tiling (see header): big tiles to amortize per-step overhead, and at
    # least 2 grid steps for mid-size batches so v7x megacore splits the work.
    if B <= 1024:
        tile_b = B
    else:
        tile_b = min(_round_up(pl.cdiv(B, 2), 8), 4096)
    grid = (pl.cdiv(B, tile_b),)

    itemsize = jnp.dtype(compute_dtype).itemsize
    cost = pl.CostEstimate(
        flops=2 * B * (kin * H4 + H4 * out_dim),
        transcendentals=0,
        bytes_accessed=(B * kin * itemsize            # activations in
                        + B * out_dim * 4             # output
                        + kin * H4 * itemsize         # branch weights
                        + (H4 + H4 * out_dim + out_dim) * 4),  # biases + fc5
    )

    def x_spec(n):
        return pl.BlockSpec((tile_b, n), lambda i: (i, 0))

    def resident(shape):
        return pl.BlockSpec(shape, lambda i: (0, 0))

    # NOTE: the hidden slab h (tile_b x 128 f32) is staged through VMEM by Mosaic
    # for large tiles; if v5e bundle dumps ever show vld/vst saturation, sub-chunk
    # the body with an unrolled fori_loop over ~128-row slices of the batch tile.
    return pl.pallas_call(
        multimodal_kernel,
        out_shape=jax.ShapeDtypeStruct((B, out_dim), jnp.float32),
        grid=grid,
        in_specs=[
            x_spec(in_sizes[0]), x_spec(in_sizes[1]),
            x_spec(in_sizes[2]), x_spec(in_sizes[3]),
            resident(w1p.shape), resident(w2p.shape),
            resident(w3p.shape), resident(w4p.shape),
            resident(bh.shape), resident(w5.shape), resident(b5.shape),
        ],
        out_specs=pl.BlockSpec((tile_b, out_dim), lambda i: (i, 0)),
        compiler_params=pltpu.CompilerParams(dimension_semantics=("parallel",)),
        cost_estimate=cost,
    )(x1, x2, x3, x4, w1p, w2p, w3p, w4p, bh, w5, b5)


def init_params(key, in1, in2, in3, in4, hidden, out_dim=3):
    ks = jax.random.split(key, 10)

    def lin(kw, kb, fan_in, fan_out):
        # PyTorch nn.Linear default init: U(-1/sqrt(fan_in), 1/sqrt(fan_in)).
        bound = 1.0 / (fan_in ** 0.5)
        w = jax.random.uniform(kw, (fan_in, fan_out), jnp.float32, -bound, bound)
        b = jax.random.uniform(kb, (1, fan_out), jnp.float32, -bound, bound)
        return w, b

    w1, b1 = lin(ks[0], ks[1], in1, hidden)
    w2, b2 = lin(ks[2], ks[3], in2, hidden)
    w3, b3 = lin(ks[4], ks[5], in3, hidden)
    w4, b4 = lin(ks[6], ks[7], in4, hidden)
    w5, b5 = lin(ks[8], ks[9], hidden * 4, out_dim)
    return (w1, b1, w2, b2, w3, b3, w4, b4, w5, b5)


def reference_forward(x1, x2, x3, x4, params):
    (w1, b1, w2, b2, w3, b3, w4, b4, w5, b5) = params
    h1 = jnp.maximum(x1 @ w1 + b1, 0.0)
    h2 = jnp.maximum(x2 @ w2 + b2, 0.0)
    h3 = jnp.maximum(x3 @ w3 + b3, 0.0)
    h4 = jnp.maximum(x4 @ w4 + b4, 0.0)
    combined = jnp.concatenate([h1, h2, h3, h4], axis=1)
    return combined @ w5 + b5


if __name__ == "__main__":
    # Small shapes consistent with the module's forward.
    B = 2
    in1, in2, in3, in4 = 8, 12, 16, 10
    hidden = 32

    key = jax.random.PRNGKey(0)
    k_in, k_par = jax.random.split(key)
    kx = jax.random.split(k_in, 4)
    x1 = jax.random.normal(kx[0], (B, in1), jnp.float32)
    x2 = jax.random.normal(kx[1], (B, in2), jnp.float32)
    x3 = jax.random.normal(kx[2], (B, in3), jnp.float32)
    x4 = jax.random.normal(kx[3], (B, in4), jnp.float32)

    params = init_params(k_par, in1, in2, in3, in4, hidden)
    packed = pack_params(params, hidden)
    ref = reference_forward(x1, x2, x3, x4, params)

    # f32 path: exact (zero-padded columns contribute exactly 0.0).
    out = jax.block_until_ready(multimodal_forward(x1, x2, x3, x4, packed))
    assert out.shape == (B, 3), out.shape
    assert jnp.allclose(out, ref, atol=1e-5, rtol=1e-5), (out, ref)

    # bf16-input / f32-accumulate path (v6e / v7x HBM-traffic optimization):
    # compared against the f32 reference with a correspondingly loose tolerance.
    out_bf16 = jax.block_until_ready(
        multimodal_forward(x1, x2, x3, x4, packed, compute_dtype=jnp.bfloat16))
    assert out_bf16.shape == (B, 3), out_bf16.shape
    assert jnp.allclose(out_bf16, ref, atol=1e-1, rtol=1e-1), (out_bf16, ref)

    print("KERNEL_OK")
</pallas_src>

<mosaic_0001>
module attributes {stable_mosaic.version = 11 : i64} {
  func.func @multimodal_kernel(%arg0: i32, %arg1: memref<2x8xf32, #tpu.memory_space<vmem>>, %arg2: memref<2x12xf32, #tpu.memory_space<vmem>>, %arg3: memref<2x16xf32, #tpu.memory_space<vmem>>, %arg4: memref<2x10xf32, #tpu.memory_space<vmem>>, %arg5: memref<8x128xf32, #tpu.memory_space<vmem>>, %arg6: memref<12x128xf32, #tpu.memory_space<vmem>>, %arg7: memref<16x128xf32, #tpu.memory_space<vmem>>, %arg8: memref<10x128xf32, #tpu.memory_space<vmem>>, %arg9: memref<1x128xf32, #tpu.memory_space<vmem>>, %arg10: memref<128x3xf32, #tpu.memory_space<vmem>>, %arg11: memref<1x3xf32, #tpu.memory_space<vmem>>, %arg12: memref<2x3xf32, #tpu.memory_space<vmem>>) attributes {dimension_semantics = [#tpu.dimension_semantics<parallel>], iteration_bounds = array<i64: 1>, scalar_prefetch = 0 : i64, scratch_operands = 0 : i64, tpu.core_type = #tpu.core_type<tc>, window_params = [{transform_indices = @transform_0, window_bounds = array<i64: 2, 8>}, {transform_indices = @transform_1, window_bounds = array<i64: 2, 12>}, {transform_indices = @transform_2, window_bounds = array<i64: 2, 16>}, {transform_indices = @transform_3, window_bounds = array<i64: 2, 10>}, {pipeline_mode = #tpu.pipeline_mode<synchronous>, transform_indices = @transform_4, window_bounds = array<i64: 8, 128>}, {pipeline_mode = #tpu.pipeline_mode<synchronous>, transform_indices = @transform_5, window_bounds = array<i64: 12, 128>}, {pipeline_mode = #tpu.pipeline_mode<synchronous>, transform_indices = @transform_6, window_bounds = array<i64: 16, 128>}, {pipeline_mode = #tpu.pipeline_mode<synchronous>, transform_indices = @transform_7, window_bounds = array<i64: 10, 128>}, {pipeline_mode = #tpu.pipeline_mode<synchronous>, transform_indices = @transform_8, window_bounds = array<i64: 1, 128>}, {pipeline_mode = #tpu.pipeline_mode<synchronous>, transform_indices = @transform_9, window_bounds = array<i64: 128, 3>}, {pipeline_mode = #tpu.pipeline_mode<synchronous>, transform_indices = @transform_10, window_bounds = array<i64: 1, 3>}, {transform_indices = @transform_11, window_bounds = array<i64: 2, 3>}]} {
    %c0 = arith.constant 0 : index
    %c0_0 = arith.constant 0 : index
    %0 = vector.load %arg1[%c0, %c0_0] : memref<2x8xf32, #tpu.memory_space<vmem>>, vector<2x8xf32>
    %c0_1 = arith.constant 0 : index
    %c0_2 = arith.constant 0 : index
    %1 = vector.load %arg5[%c0_1, %c0_2] : memref<8x128xf32, #tpu.memory_space<vmem>>, vector<8x128xf32>
    %cst = arith.constant dense<0.000000e+00> : vector<2x128xf32>
    %2 = tpu.matmul %0, %1, %cst {dimension_numbers = #tpu.dot_dimension_numbers<[1], [0], [0], [1], [0, 0, 1, 1], [], []>} : vector<2x8xf32>, vector<8x128xf32>, vector<2x128xf32> -> vector<2x128xf32>
    %c0_3 = arith.constant 0 : index
    %c0_4 = arith.constant 0 : index
    %3 = vector.load %arg2[%c0_3, %c0_4] : memref<2x12xf32, #tpu.memory_space<vmem>>, vector<2x12xf32>
    %c0_5 = arith.constant 0 : index
    %c0_6 = arith.constant 0 : index
    %4 = vector.load %arg6[%c0_5, %c0_6] : memref<12x128xf32, #tpu.memory_space<vmem>>, vector<12x128xf32>
    %cst_7 = arith.constant dense<0.000000e+00> : vector<2x128xf32>
    %5 = tpu.matmul %3, %4, %cst_7 {dimension_numbers = #tpu.dot_dimension_numbers<[1], [0], [0], [1], [0, 0, 1, 1], [], []>} : vector<2x12xf32>, vector<12x128xf32>, vector<2x128xf32> -> vector<2x128xf32>
    %6 = arith.addf %2, %5 : vector<2x128xf32>
    %c0_8 = arith.constant 0 : index
    %c0_9 = arith.constant 0 : index
    %7 = vector.load %arg3[%c0_8, %c0_9] : memref<2x16xf32, #tpu.memory_space<vmem>>, vector<2x16xf32>
    %c0_10 = arith.constant 0 : index
    %c0_11 = arith.constant 0 : index
    %8 = vector.load %arg7[%c0_10, %c0_11] : memref<16x128xf32, #tpu.memory_space<vmem>>, vector<16x128xf32>
    %cst_12 = arith.constant dense<0.000000e+00> : vector<2x128xf32>
    %9 = tpu.matmul %7, %8, %cst_12 {dimension_numbers = #tpu.dot_dimension_numbers<[1], [0], [0], [1], [0, 0, 1, 1], [], []>} : vector<2x16xf32>, vector<16x128xf32>, vector<2x128xf32> -> vector<2x128xf32>
    %10 = arith.addf %6, %9 : vector<2x128xf32>
    %c0_13 = arith.constant 0 : index
    %c0_14 = arith.constant 0 : index
    %11 = vector.load %arg4[%c0_13, %c0_14] : memref<2x10xf32, #tpu.memory_space<vmem>>, vector<2x10xf32>
    %c0_15 = arith.constant 0 : index
    %c0_16 = arith.constant 0 : index
    %12 = vector.load %arg8[%c0_15, %c0_16] : memref<10x128xf32, #tpu.memory_space<vmem>>, vector<10x128xf32>
    %cst_17 = arith.constant dense<0.000000e+00> : vector<2x128xf32>
    %13 = tpu.matmul %11, %12, %cst_17 {dimension_numbers = #tpu.dot_dimension_numbers<[1], [0], [0], [1], [0, 0, 1, 1], [], []>} : vector<2x10xf32>, vector<10x128xf32>, vector<2x128xf32> -> vector<2x128xf32>
    %14 = arith.addf %10, %13 : vector<2x128xf32>
    %c0_18 = arith.constant 0 : index
    %c0_19 = arith.constant 0 : index
    %15 = vector.load %arg9[%c0_18, %c0_19] : memref<1x128xf32, #tpu.memory_space<vmem>>, vector<1x128xf32>
    %16 = vector.broadcast %15 : vector<1x128xf32> to vector<2x128xf32>
    %17 = arith.addf %14, %16 : vector<2x128xf32>
    %cst_20 = arith.constant 0.000000e+00 : f32
    %18 = vector.broadcast %cst_20 : f32 to vector<2x128xf32>
    %19 = arith.maximumf %17, %18 : vector<2x128xf32>
    %c0_21 = arith.constant 0 : index
    %c0_22 = arith.constant 0 : index
    %20 = vector.load %arg10[%c0_21, %c0_22] : memref<128x3xf32, #tpu.memory_space<vmem>>, vector<128x3xf32>
    %cst_23 = arith.constant dense<0.000000e+00> : vector<2x3xf32>
    %21 = tpu.matmul %19, %20, %cst_23 {dimension_numbers = #tpu.dot_dimension_numbers<[1], [0], [0], [1], [0, 0, 1, 1], [], []>} : vector<2x128xf32>, vector<128x3xf32>, vector<2x3xf32> -> vector<2x3xf32>
    %c0_24 = arith.constant 0 : index
    %c0_25 = arith.constant 0 : index
    %22 = vector.load %arg11[%c0_24, %c0_25] : memref<1x3xf32, #tpu.memory_space<vmem>>, vector<1x3xf32>
    %23 = vector.broadcast %22 : vector<1x3xf32> to vector<2x3xf32>
    %24 = arith.addf %21, %23 : vector<2x3xf32>
    %c0_26 = arith.constant 0 : index
    %c0_27 = arith.constant 0 : index
    %25 = vector.load %arg12[%c0_26, %c0_27] : memref<2x3xf32, #tpu.memory_space<vmem>>, vector<2x3xf32>
    tpu.vector_store %arg12[%c0_26, %c0_27], %24 {strides = array<i32>} : memref<2x3xf32, #tpu.memory_space<vmem>>, vector<2x3xf32>,
    return
  }
  func.func @transform_0(%arg0: i32) -> (i32, i32) {
    %c0_i32 = arith.constant 0 : i32
    %c0_i32_0 = arith.constant 0 : i32
    return %arg0, %c0_i32 : i32, i32
  }
  func.func @transform_1(%arg0: i32) -> (i32, i32) {
    %c0_i32 = arith.constant 0 : i32
    %c0_i32_0 = arith.constant 0 : i32
    return %arg0, %c0_i32 : i32, i32
  }
  func.func @transform_2(%arg0: i32) -> (i32, i32) {
    %c0_i32 = arith.constant 0 : i32
    %c0_i32_0 = arith.constant 0 : i32
    return %arg0, %c0_i32 : i32, i32
  }
  func.func @transform_3(%arg0: i32) -> (i32, i32) {
    %c0_i32 = arith.constant 0 : i32
    %c0_i32_0 = arith.constant 0 : i32
    return %arg0, %c0_i32 : i32, i32
  }
  func.func @transform_4(%arg0: i32) -> (i32, i32) {
    %c0_i32 = arith.constant 0 : i32
    %c0_i32_0 = arith.constant 0 : i32
    %c0_i32_1 = arith.constant 0 : i32
    return %c0_i32, %c0_i32_0 : i32, i32
  }
  func.func @transform_5(%arg0: i32) -> (i32, i32) {
    %c0_i32 = arith.constant 0 : i32
    %c0_i32_0 = arith.constant 0 : i32
    %c0_i32_1 = arith.constant 0 : i32
    return %c0_i32, %c0_i32_0 : i32, i32
  }
  func.func @transform_6(%arg0: i32) -> (i32, i32) {
    %c0_i32 = arith.constant 0 : i32
    %c0_i32_0 = arith.constant 0 : i32
    %c0_i32_1 = arith.constant 0 : i32
    return %c0_i32, %c0_i32_0 : i32, i32
  }
  func.func @transform_7(%arg0: i32) -> (i32, i32) {
    %c0_i32 = arith.constant 0 : i32
    %c0_i32_0 = arith.constant 0 : i32
    %c0_i32_1 = arith.constant 0 : i32
    return %c0_i32, %c0_i32_0 : i32, i32
  }
  func.func @transform_8(%arg0: i32) -> (i32, i32) {
    %c0_i32 = arith.constant 0 : i32
    %c0_i32_0 = arith.constant 0 : i32
    %c0_i32_1 = arith.constant 0 : i32
    return %c0_i32, %c0_i32_0 : i32, i32
  }
  func.func @transform_9(%arg0: i32) -> (i32, i32) {
    %c0_i32 = arith.constant 0 : i32
    %c0_i32_0 = arith.constant 0 : i32
    %c0_i32_1 = arith.constant 0 : i32
    return %c0_i32, %c0_i32_0 : i32, i32
  }
  func.func @transform_10(%arg0: i32) -> (i32, i32) {
    %c0_i32 = arith.constant 0 : i32
    %c0_i32_0 = arith.constant 0 : i32
    %c0_i32_1 = arith.constant 0 : i32
    return %c0_i32, %c0_i32_0 : i32, i32
  }
  func.func @transform_11(%arg0: i32) -> (i32, i32) {
    %c0_i32 = arith.constant 0 : i32
    %c0_i32_0 = arith.constant 0 : i32
    return %arg0, %c0_i32 : i32, i32
  }
}

</mosaic_0001>

<bundles_post_ra>
// kernel: tpu_custom_call.1
= control target key start
LH: loop header
LB: loop body
LE: loop exit
PB: predicated region body
PF: predicated region fallthrough
CT: control target
= control target key end

     0   :  { %vm48_vm0 = vcmask 1043456   ;;  %vm44_vm1 = vcmask 97280   ;;  %vm131_vm2 = vcmask 1041408   ;;  %vm99_vm3 = vcmask 130048   ;;  %s406_s0 = inlined_call_operand.vmem [shape: f32[2,8], index: 0, kind: input, shape index: {}]   ;;  %s407_s1 = inlined_call_operand.vmem [shape: f32[2,12], index: 1, kind: input, shape index: {}]   ;;  %s408_s2 = inlined_call_operand.vmem [shape: f32[2,16], index: 2, kind: input, shape index: {}]   ;;  %s409_s3 = inlined_call_operand.vmem [shape: f32[2,10], index: 3, kind: input, shape index: {}]   ;;  %s410_s4 = inlined_call_operand.vmem [shape: f32[8,128], index: 4, kind: input, shape index: {}]   ;;  %s411_s5 = inlined_call_operand.vmem [shape: f32[12,128], index: 5, kind: input, shape index: {}]   ;;  %s412_s6 = inlined_call_operand.vmem [shape: f32[16,128], index: 6, kind: input, shape index: {}]   ;;  %s413_s7 = inlined_call_operand.vmem [shape: f32[10,128], index: 7, kind: input, shape index: {}]   ;;  %s414_s8 = inlined_call_operand.vmem [shape: f32[1,128], index: 8, kind: input, shape index: {}]   ;;  %s415_s9 = inlined_call_operand.vmem [shape: f32[128,3], index: 9, kind: input, shape index: {}]   ;;  %s416_s10 = inlined_call_operand.vmem [shape: f32[1,3], index: 10, kind: input, shape index: {}]   ;;  %s417_s11 = inlined_call_operand.hbm [shape: f32[2,3], index: 11, kind: output, shape index: {}]  }
   0x1   :  { %v43_v0 = vld [vmem:[%s411_s5 + $0x8] sm:$0xf]  ;;  %v42_v1 = vld [vmem:[%s411_s5] sm:$0xff]  ;;  %v177_v9 = vld [vmem:[%s415_s9 + $0x78] sm:$0xff]  ;;  %vm127_vm4 = vcmask 80896  }
   0x2   :  { %220 = vmatpush.msk.msra.mxu0 %vm48_vm0, %v43_v0  ;;  %v41_v2 = vld [vmem:[%s407_s1] sm:$0x3]  ;;  %v98_v3 = vld [vmem:[%s412_s6 + $0x8] sm:$0xff]  ;;  %v176_v11 = vld [vmem:[%s415_s9 + $0x70] sm:$0xff]  ;;  %182 = vmatpush.msra.mxu1 %v177_v9 }
   0x3   :  { %v97_v4 = vld [vmem:[%s412_s6] sm:$0xff]  ;;  %117 = vmatpush.msra.mxu2 %v98_v3  ;;  %v126_v6 = vld [vmem:[%s413_s7 + $0x8] sm:$0x3] }
   0x4   :  { %v40_v5 = vld [vmem:[%s410_s4] sm:$0xff]  ;;  %67 = vmatpush.msra.mxu0 %v42_v1  ;;  %224 = vmatpush.msk.msra.mxu3 %vm131_vm2, %v126_v6 }
   0x5   :  { %v96_v7 = vld [vmem:[%s408_s2] sm:$0x3]  ;;  %221 = vmatmul.msk.f32.vlgmr.msra.gmra.mxu0 %vm44_vm1, %v41_v2  ;;  %118 = vmatpush.msra.mxu2 %v97_v4 }
   0x6   :  { %v125_v8 = vld [vmem:[%s413_s7] sm:$0xff]  ;;  %91 = vmatpush.msrb.mxu0 %v40_v5  ;;  %223 = vmatmul.msk.f32.vlgmr.msra.gmra.mxu2 %vm99_vm3, %v96_v7 }
   0x7   :  { %v124_v10 = vld [vmem:[%s409_s3] sm:$0x3]  ;;  %150 = vmatpush.msra.mxu3 %v125_v8 }
   0x8   :  { %16 = vsyncpa [#allocation3], 0  ;;  %225 = vmatmul.msk.f32.vlgmr.msra.gmra.mxu3 %vm127_vm4, %v124_v10  ;;  %v175_v12 = vld [vmem:[%s415_s9 + $0x68] sm:$0xff]  ;;  %183 = vmatpush.msra.mxu1 %v176_v11  ;;  %v39_v13 = vld [vmem:[%s406_s0] sm:$0x3]  ;;  %vm72_vm5 = vcmask 64512  }
   0x9   :  { %v174_v14 = vld [vmem:[%s415_s9 + $0x60] sm:$0xff]  ;;  %v173_v15 = vld [vmem:[%s415_s9 + $0x58] sm:$0xff]  ;;  %v172_v16 = vld [vmem:[%s415_s9 + $0x50] sm:$0xff]  ;;  %s211_s25 = sshll.u32 %s417_s11, 4  ;;  %vm202_vm6 = vcmask 17408   ;;  %s212_s25 = int_to_ptr.hbm [resolvable:$true] %s211_s25 }
   0xa   :  { %184 = vmatpush.msra.mxu1 %v175_v12  ;;  %v171_v17 = vld [vmem:[%s415_s9 + $0x48] sm:$0xff]  ;;  %v170_v18 = vld [vmem:[%s415_s9 + $0x40] sm:$0xff]  ;;  %v169_v19 = vld [vmem:[%s415_s9 + $0x38] sm:$0xff] }
   0xb   :  { %v168_v20 = vld [vmem:[%s415_s9 + $0x30] sm:$0xff]  ;;  %v167_v21 = vld [vmem:[%s415_s9 + $0x28] sm:$0xff]  ;;  %v166_v22 = vld [vmem:[%s415_s9 + $0x20] sm:$0xff] }
   0xc   :  { %185 = vmatpush.msra.mxu1 %v174_v14  ;;  %v165_v23 = vld [vmem:[%s415_s9 + $0x18] sm:$0xff]  ;;  %v164_v24 = vld [vmem:[%s415_s9 + $0x10] sm:$0xff]  ;;  %v163_v25 = vld [vmem:[%s415_s9 + $0x8] sm:$0xff] }
   0xd   :  { %222 = vmatmul.msk.f32.vlgmr.msrb.gmra.mxu0 %vm72_vm5, %v39_v13  ;;  %v162_v26 = vld [vmem:[%s415_s9] sm:$0xff]  ;;  %s255_s9 = smov [#allocation2]  }
   0xe   :  { %186 = vmatpush.msra.mxu1 %v173_v15  ;;  %v227_v33 = vld [vmem:[%s414_s8] ss:$0 sm:$0xff]  ;;  %s209_s22 = sshll.u32 %s255_s9, 4  ;;  %s210_s22 = int_to_ptr.vmem [resolvable:$true] %s209_s22 }
   0xf   :  { %v228_v37 = vld [vmem:[%s416_s10] ss:$0 sm:$0xff] }
  0x10   :  { %187 = vmatpush.msra.mxu1 %v172_v16 }
  0x12   :  { %188 = vmatpush.msra.mxu1 %v171_v17 }
  0x14   :  { %189 = vmatpush.msra.mxu1 %v170_v18 }
  0x16   :  { %190 = vmatpush.msra.mxu1 %v169_v19 }
  0x18   :  { %191 = vmatpush.msra.mxu1 %v168_v20 }
  0x1a   :  { %192 = vmatpush.msra.mxu1 %v167_v21 }
  0x1c   :  { %193 = vmatpush.msra.mxu1 %v166_v22 }
  0x1e   :  { %194 = vmatpush.msra.mxu1 %v165_v23 }
  0x20   :  { %195 = vmatpush.msra.mxu1 %v164_v24 }
  0x22   :  { %196 = vmatpush.msra.mxu1 %v163_v25 }
  0x24   :  { %197 = vmatpush.msra.mxu1 %v162_v26 }
  0x82   :  { %v69_v27 = vpop.f32.mrf.mxu0 }
  0x89   :  { %v120_v29 = vpop.f32.mrf.mxu2 }
  0x8a   :  { %v93_v28 = vpop.f32.mrf.mxu0 }
  0x8b   :  { %v94_v30 = vadd.f32 %v93_v28, %v69_v27  ;;  %v152_v31 = vpop.f32.mrf.mxu3 }
  0x8d   :  { %v123_v32 = vadd.f32 %v120_v29, %v94_v30 }
  0x8f   :  { %v155_v34 = vadd.f32 %v152_v31, %v123_v32 }
  0x91   :  { %v160_v35 = vadd.f32 %v227_v33, %v155_v34 }
  0x93   :  { %v161_v36 = vmax.f32 %v160_v35, 0.0 }
  0x95   :  { %198 = vmatmul.f32.vlgmr.msra.gmra.mxu1 %v161_v36 }
 0x112   :  { %v199_v38 = vpop.f32.mrf.mxu1 }
 0x113   :  { %v200_v39 = vadd.f32 %v228_v37, %v199_v38 }
 0x115   :  { %203 = vst.msk [vmem:[#allocation2] sm:$0x3] %vm202_vm6, %v200_v39 }
 0x116   :  { %214 = dma.vmem_to_hbm [thread:$0]  %s210_s22, 32, %s212_s25, [#allocation3]  }
 0x117   :  { %253 = dma.done.wait [#allocation3], 32  }
 0x118   :  { %254 = vsyncadd [#allocation3], 4294967264 }
 0x119   :  { %219 = vsyncpa [#allocation3], 1 }

</bundles_post_ra>
